<compile_context>
chip_gen: v7x
topology: tpu7x:2x2x1
jax: 0.10.0
libtpu: 0.0.40
codegen_flags: <defaults>
</compile_context>

<pallas_src>
import math

import numpy as np
import jax
import jax.numpy as jnp
from jax.experimental import pallas as pl
from jax.experimental.pallas import tpu as pltpu

# Standard offset2bbox clamp on dw/dh (log(1000/16)).
_BBOX_CLAMP = math.log(1000.0 / 16.0)

# Pad total anchor count to a multiple of this so that both the decode view
# [4, Kp/128, 128] and the flattened cls view [B*Kp*C/128, 128] have a row
# count that is a multiple of 8 for any B, C.
_K_ALIGN = 1024


def _pick_block_rows(rows, cap):
    """Largest multiple of 8 that divides `rows` and is <= cap (rows % 8 == 0)."""
    t = min(cap, rows)
    t -= t % 8
    while t > 8 and rows % t:
        t -= 8
    return max(t, 8)


# ----------------------------------------------------------------------------
# Kernel 1: class activation (sigmoid), elementwise, lane-dense big blocks
# ----------------------------------------------------------------------------
def _sigmoid_kernel(x_ref, o_ref):
    o_ref[...] = jax.nn.sigmoid(x_ref[...])


def pallas_sigmoid(x, max_block_rows=2048):
    """Elementwise sigmoid over a contiguous array whose size is a multiple of 128.

    Dtype pass-through (bf16 stays bf16 on v6e/v7x); no pads, no slices — the
    caller guarantees alignment by construction.
    """
    shape = x.shape
    n = x.size
    assert n % 128 == 0, "caller must provide a 128-aligned buffer"
    rows = n // 128
    tr = _pick_block_rows(rows, max_block_rows)
    mat = x.reshape(rows, 128)            # free reshape of a contiguous buffer
    out = pl.pallas_call(
        _sigmoid_kernel,
        out_shape=jax.ShapeDtypeStruct((rows, 128), x.dtype),
        grid=(rows // tr,),
        in_specs=[pl.BlockSpec((tr, 128), lambda i: (i, 0))],
        out_specs=pl.BlockSpec((tr, 128), lambda i: (i, 0)),
        compiler_params=pltpu.CompilerParams(
            dimension_semantics=("parallel",),
            vmem_limit_bytes=32 * 1024 * 1024),
    )(mat)
    return out.reshape(shape)


# ----------------------------------------------------------------------------
# Kernel 2: offset2bbox decode + clip, component-major, full sublane occupancy
# ----------------------------------------------------------------------------
def _decode_kernel(img_info_ref, anchors_ref, loc_ref, out_ref):
    # anchors_ref: (4, TR, 128) f32; loc_ref/out_ref: (4, TR, 128) (batch squeezed)
    b = pl.program_id(1)

    ax1 = anchors_ref[0]
    ay1 = anchors_ref[1]
    ax2 = anchors_ref[2]
    ay2 = anchors_ref[3]

    w = ax2 - ax1 + 1.0
    h = ay2 - ay1 + 1.0
    cx = ax1 + 0.5 * w
    cy = ay1 + 0.5 * h

    loc = loc_ref[...].astype(jnp.float32)          # cast in-register (bf16 safe)
    dx = loc[0]
    dy = loc[1]
    dw = jnp.minimum(loc[2], _BBOX_CLAMP)
    dh = jnp.minimum(loc[3], _BBOX_CLAMP)

    pcx = dx * w + cx
    pcy = dy * h + cy
    half_pw = 0.5 * (jnp.exp(dw) * w)
    half_ph = 0.5 * (jnp.exp(dh) * h)

    img_h = img_info_ref[b, 0]
    img_w = img_info_ref[b, 1]
    wm1 = img_w - 1.0
    hm1 = img_h - 1.0

    # direct per-component stores (no sublane-axis concatenate)
    out_ref[0] = jnp.clip(pcx - half_pw, 0.0, wm1)
    out_ref[1] = jnp.clip(pcy - half_ph, 0.0, hm1)
    out_ref[2] = jnp.clip(pcx + half_pw - 1.0, 0.0, wm1)
    out_ref[3] = jnp.clip(pcy + half_ph - 1.0, 0.0, hm1)


def pallas_decode(anchors_3d, loc_cm, img_hw, max_block_rows=512):
    """anchors_3d [4, R, 128] (pre-padded), loc_cm [B, 4, Kp] (pre-padded, native
    dtype), img_hw [B, 2] (h, w)  ->  boxes component-major [B, 4, Kp] f32."""
    B, _, kp = loc_cm.shape
    rows = kp // 128
    tr = _pick_block_rows(rows, max_block_rows)
    n_r = rows // tr
    loc_4d = loc_cm.reshape(B, 4, rows, 128)        # free reshape

    out = pl.pallas_call(
        _decode_kernel,
        out_shape=jax.ShapeDtypeStruct((B, 4, rows, 128), jnp.float32),
        grid_spec=pltpu.PrefetchScalarGridSpec(
            num_scalar_prefetch=1,
            grid=(n_r, B),            # big n_r axis outermost (v7x megacore);
            in_specs=[                # b innermost: anchors block reused across b
                pl.BlockSpec((4, tr, 128), lambda r, b, info: (0, r, 0)),
                pl.BlockSpec((None, 4, tr, 128), lambda r, b, info: (b, 0, r, 0)),
            ],
            out_specs=pl.BlockSpec((None, 4, tr, 128),
                                   lambda r, b, info: (b, 0, r, 0)),
        ),
        compiler_params=pltpu.CompilerParams(
            dimension_semantics=("parallel", "parallel"),
            vmem_limit_bytes=32 * 1024 * 1024),
    )(img_hw.astype(jnp.float32), anchors_3d, loc_4d)

    return out.reshape(B, 4, kp)      # stays component-major; no transpose here


# ----------------------------------------------------------------------------
# Static anchor generation (numpy, hoisted out of the per-inference graph)
# ----------------------------------------------------------------------------
def _make_base_anchors_np(stride, ratios, scales, anchor_base_scale=4.0):
    base_size = float(stride) * anchor_base_scale
    ctr = 0.5 * (stride - 1.0)
    rows = []
    for r in ratios:
        for s in scales:
            w = base_size * s * (1.0 / r) ** 0.5
            h = base_size * s * (r) ** 0.5
            rows.append([ctr - 0.5 * (w - 1.0), ctr - 0.5 * (h - 1.0),
                         ctr + 0.5 * (w - 1.0), ctr + 0.5 * (h - 1.0)])
    return np.asarray(rows, dtype=np.float64)                 # [A, 4]


def _level_anchors_cm_np(h, w, stride, base_anchors):
    """Component-major anchors [4, K], K = h*w*A, k = (y*w + x)*A + a."""
    shift_x = np.arange(w, dtype=np.float64) * stride
    shift_y = np.arange(h, dtype=np.float64) * stride
    sx, sy = np.meshgrid(shift_x, shift_y)                    # [h, w]
    sx = sx.reshape(-1, 1)
    sy = sy.reshape(-1, 1)
    comps = []
    for c, s in zip(range(4), (sx, sy, sx, sy)):
        comps.append((s + base_anchors[None, :, c]).reshape(-1))
    return np.stack(comps, axis=0)                            # [4, K]


def retina_post_setup(spatial_shapes, strides, ratios, scales,
                      anchor_base_scale=4.0):
    """Build the static, padded, component-major anchor tensor once."""
    A = len(ratios) * len(scales)
    sum_k = sum(h * w * A for (h, w) in spatial_shapes)
    kp = ((sum_k + _K_ALIGN - 1) // _K_ALIGN) * _K_ALIGN
    levels = []
    for (h, w), stride in zip(spatial_shapes, strides):
        base = _make_base_anchors_np(stride, ratios, scales, anchor_base_scale)
        levels.append(_level_anchors_cm_np(h, w, stride, base))
    anchors = np.concatenate(levels, axis=1)                  # [4, sum_k]
    anchors = np.pad(anchors, ((0, 0), (0, kp - sum_k)))      # setup-time only
    anchors_3d = jnp.asarray(anchors.reshape(4, kp // 128, 128),
                             dtype=jnp.float32)
    return anchors_3d, sum_k, kp


# ----------------------------------------------------------------------------
# Layout plumbing (matches BasePostProcess.permute_preds channel ordering)
# ----------------------------------------------------------------------------
def permute_cls(cls_raw, num_anchors, num_cls_channels):
    """[B, A*C, H, W] -> [B, H*W*A, C]."""
    B, _, H, W = cls_raw.shape
    K = num_anchors * H * W
    return jnp.transpose(cls_raw, (0, 2, 3, 1)).reshape(B, K, num_cls_channels)


def loc_to_component_major(loc_raw, num_anchors):
    """[B, A*4, H, W] -> [B, 4, K] with K index = (h*W+w)*A + a."""
    B, _, H, W = loc_raw.shape
    A = num_anchors
    x = loc_raw.reshape(B, A, 4, H, W)
    x = jnp.transpose(x, (0, 2, 3, 4, 1))                     # [B, 4, H, W, A]
    return x.reshape(B, 4, H * W * A)


# ----------------------------------------------------------------------------
# Forward (eval / inference path of BasePostProcess)
# ----------------------------------------------------------------------------
def retina_post_forward(inputs, num_classes, ratios, scales,
                        anchors_3d, sum_k, kp):
    image_info = inputs['image_info']            # [B, >=2]: (img_h, img_w, ...)
    mlvl_raw_preds = inputs['preds']

    num_cls_channels = num_classes - 1           # sigmoid => no background channel
    num_anchors = len(ratios) * len(scales)
    B = mlvl_raw_preds[0][0].shape[0]

    cls_list, loc_list = [], []
    for cls_raw, loc_raw in mlvl_raw_preds:
        cls_list.append(permute_cls(cls_raw, num_anchors, num_cls_channels))
        loc_list.append(loc_to_component_major(loc_raw, num_anchors))

    # Fold the padding into the single concatenate (no jnp.pad pass).
    # Pad class logits with a large negative so padded entries score ~0 and
    # are harmless to any downstream threshold / top-k.
    pad_k = kp - sum_k
    if pad_k:
        cls_list.append(jnp.full((B, pad_k, num_cls_channels), -1e9,
                                 dtype=cls_list[0].dtype))
        loc_list.append(jnp.zeros((B, 4, pad_k), dtype=loc_list[0].dtype))

    cls_all = jnp.concatenate(cls_list, axis=1)               # [B, Kp, C]
    loc_all = jnp.concatenate(loc_list, axis=2)               # [B, 4, Kp]

    scores = pallas_sigmoid(cls_all)                          # [B, Kp, C]
    boxes_cm = pallas_decode(anchors_3d, loc_all, image_info[:, :2])  # [B, 4, Kp]

    # Padded region is kept (scores ~0 there); boxes stay component-major —
    # the [B, K, 4] interleave is deferred to the selection-stage gather.
    # TODO(synk): roi_predictor's score-threshold / pre-NMS top-k / NMS are
    # data-dependent and are not reproduced here.
    return {'dt_scores': scores, 'dt_bboxes_cm': boxes_cm, 'valid_k': sum_k}


if __name__ == "__main__":
    key = jax.random.PRNGKey(0)

    B = 2
    num_classes = 4                                  # incl. background
    C = num_classes - 1                              # sigmoid => 3 channels
    ratios = (0.5, 1.0, 2.0)
    scales = (1.0, 2.0 ** (1.0 / 3.0), 2.0 ** (2.0 / 3.0))
    A = len(ratios) * len(scales)                    # 9 anchors / location
    strides = (8, 16)
    spatial = ((8, 8), (4, 4))

    preds = []
    keys = jax.random.split(key, 2 * len(strides))
    for i, (h, w) in enumerate(spatial):
        cls_raw = jax.random.normal(keys[2 * i], (B, A * C, h, w),
                                    dtype=jnp.float32)
        loc_raw = 0.1 * jax.random.normal(keys[2 * i + 1], (B, A * 4, h, w),
                                          dtype=jnp.float32)
        preds.append((cls_raw, loc_raw))

    image_info = jnp.array([[64.0, 64.0, 1.0],
                            [64.0, 64.0, 1.0]], dtype=jnp.float32)

    # Static (per input-resolution) anchors, hoisted out of the inference path.
    anchors_3d, sum_k, kp = retina_post_setup(spatial, strides, ratios, scales)

    inputs = {'strides': strides, 'image_info': image_info, 'preds': preds}
    out = retina_post_forward(inputs, num_classes, ratios, scales,
                              anchors_3d, sum_k, kp)
    jax.block_until_ready(out)

    assert sum_k == A * (8 * 8 + 4 * 4)
    assert out['dt_scores'].shape == (B, kp, C)
    assert out['dt_bboxes_cm'].shape == (B, 4, kp)

    # Valid / padded views (test-only slicing; the hot path returns padded).
    scores_valid = out['dt_scores'][:, :sum_k, :]
    boxes_valid = jnp.transpose(out['dt_bboxes_cm'][:, :, :sum_k], (0, 2, 1))
    # Padded logits were -1e9 -> padded scores must be ~0.
    assert float(jnp.max(out['dt_scores'][:, sum_k:, :])) < 1e-6

    # --- plain-JAX reference sanity check ---
    ref_scores, ref_boxes = [], []
    for (cls_raw, loc_raw), stride, (h, w) in zip(preds, strides, spatial):
        ref_scores.append(jax.nn.sigmoid(permute_cls(cls_raw, A, C)))
        anc = jnp.asarray(
            _level_anchors_cm_np(h, w, stride,
                                 _make_base_anchors_np(stride, ratios, scales)),
            dtype=jnp.float32)
        loc = loc_to_component_major(loc_raw, A)
        ax1, ay1, ax2, ay2 = anc[0], anc[1], anc[2], anc[3]
        aw = ax2 - ax1 + 1.0
        ah = ay2 - ay1 + 1.0
        cx = ax1 + 0.5 * aw
        cy = ay1 + 0.5 * ah
        dx, dy = loc[:, 0], loc[:, 1]
        dw = jnp.minimum(loc[:, 2], _BBOX_CLAMP)
        dh = jnp.minimum(loc[:, 3], _BBOX_CLAMP)
        pcx = dx * aw + cx
        pcy = dy * ah + cy
        pw = jnp.exp(dw) * aw
        ph = jnp.exp(dh) * ah
        imh = image_info[:, 0:1]
        imw = image_info[:, 1:2]
        x1 = jnp.clip(pcx - 0.5 * pw, 0.0, imw - 1.0)
        y1 = jnp.clip(pcy - 0.5 * ph, 0.0, imh - 1.0)
        x2 = jnp.clip(pcx + 0.5 * pw - 1.0, 0.0, imw - 1.0)
        y2 = jnp.clip(pcy + 0.5 * ph - 1.0, 0.0, imh - 1.0)
        ref_boxes.append(jnp.stack([x1, y1, x2, y2], axis=-1))
    ref_scores = jnp.concatenate(ref_scores, axis=1)
    ref_boxes = jnp.concatenate(ref_boxes, axis=1)

    assert jnp.allclose(scores_valid, ref_scores, atol=1e-3, rtol=1e-3)
    assert jnp.allclose(boxes_valid, ref_boxes, atol=1e-3, rtol=1e-3)

    print("KERNEL_OK")
</pallas_src>

<mosaic_0001>
module attributes {stable_mosaic.version = 11 : i64} {
  func.func @_sigmoid_kernel(%arg0: i32, %arg1: memref<48x128xf32, #tpu.memory_space<vmem>>, %arg2: memref<48x128xf32, #tpu.memory_space<vmem>>) attributes {dimension_semantics = [#tpu.dimension_semantics<parallel>], iteration_bounds = array<i64: 1>, scalar_prefetch = 0 : i64, scratch_operands = 0 : i64, tpu.core_type = #tpu.core_type<tc>, window_params = [{transform_indices = @transform_0, window_bounds = array<i64: 48, 128>}, {transform_indices = @transform_1, window_bounds = array<i64: 48, 128>}]} {
    %c0 = arith.constant 0 : index
    %c0_0 = arith.constant 0 : index
    %0 = vector.load %arg1[%c0, %c0_0] : memref<48x128xf32, #tpu.memory_space<vmem>>, vector<48x128xf32>
    %1 = arith.negf %0 : vector<48x128xf32>
    %2 = math.exp %1 : vector<48x128xf32>
    %cst = arith.constant 1.000000e+00 : f32
    %3 = vector.broadcast %cst : f32 to vector<48x128xf32>
    %4 = arith.addf %3, %2 : vector<48x128xf32>
    %5 = arith.divf %3, %4 : vector<48x128xf32>
    %c0_1 = arith.constant 0 : index
    %c0_2 = arith.constant 0 : index
    %6 = vector.load %arg2[%c0_1, %c0_2] : memref<48x128xf32, #tpu.memory_space<vmem>>, vector<48x128xf32>
    tpu.vector_store %arg2[%c0_1, %c0_2], %5 {strides = array<i32>} : memref<48x128xf32, #tpu.memory_space<vmem>>, vector<48x128xf32>,
    return
  }
  func.func @transform_0(%arg0: i32) -> (i32, i32) {
    %c0_i32 = arith.constant 0 : i32
    %c0_i32_0 = arith.constant 0 : i32
    return %arg0, %c0_i32 : i32, i32
  }
  func.func @transform_1(%arg0: i32) -> (i32, i32) {
    %c0_i32 = arith.constant 0 : i32
    %c0_i32_0 = arith.constant 0 : i32
    return %arg0, %c0_i32 : i32, i32
  }
}

</mosaic_0001>

<bundles_post_ra>
// kernel: tpu_custom_call.1
= control target key start
LH: loop header
LB: loop body
LE: loop exit
PB: predicated region body
PF: predicated region fallthrough
CT: control target
= control target key end

     0   :  { %6 = vsyncpa [#allocation3], 0  ;;  %s214_s0 = inlined_call_operand.hbm [shape: f32[48,128], index: 0, kind: input, shape index: {}]   ;;  %s215_s1 = inlined_call_operand.hbm [shape: f32[48,128], index: 1, kind: output, shape index: {}]  }
   0x1   :  { %7 = vsyncpa [#allocation4], 0  ;;  %s170_s6 = smov [#allocation2]   ;;  %s122_s10 = scalar_lea.hbm %s214_s0, 768 }
   0x2   :  { %s13_s7 = sshll.u32 %s170_s6, 4  ;;  %p123_p0 = scmp.ne.s32.totalorder %s214_s0, %s122_s10  ;;  %s14_s7 = int_to_ptr.vmem [resolvable:$true] %s13_s7 }
   0x3   :  { %p126_p1 = scmp.lt.u32.totalorder %s122_s10, %s214_s0 }
   0x5   :  { %p128_p2 = pnand %p126_p1, %p123_p0 }
   0x7   :  { %131 = shalt.err (!%p128_p2)
}
   0x8   :  { %s132_s15 = scalar_lea.vmem %s14_s7, 768  ;;  %p137_p4 = scmp.lt.s32.totalorder %s14_s7, %s14_s7 }
   0x9   :  { %p133_p3 = scmp.ne.s32.totalorder %s14_s7, %s132_s15  ;;  %p138_p5 = scmp.lt.s32.totalorder %s132_s15, %s132_s15 }
   0xb   :  { %p139_p6 = por %p138_p5, %p137_p4 }
   0xd   :  { %p140_p7 = pnand %p139_p6, %p133_p3 }
   0xf   :  { %143 = shalt.err (!%p140_p7)
}
  0x10   :  { %s171_s16 = smov 128   ;;  %s172_s17 = smov 8  }
  0x11   :  { %19 = dma.hbm_to_vmem [thread:$0]  %s214_s0, 768, %s14_s7, [#allocation3], %s171_s16, %s171_s16, %s172_s17  }
  0x12   :  { %166 = dma.done.wait [#allocation3], 768  }
  0x13   :  { %167 = vsyncadd [#allocation3], 4294966528  ;;  %v23_v0 = vld [vmem:[#allocation2] sm:$0xff]  ;;  %v24_v1 = vld [vmem:[#allocation2 + $0x8] sm:$0xff]  ;;  %s173_s0 = smov [#allocation5]  }
  0x14   :  { %v25_v2 = vld [vmem:[#allocation2 + $0x10] sm:$0xff]  ;;  %v88_v3 = vmul.f32 -1.442695, %v23_v0  ;;  %v89_v4 = vmul.f32 -1.442695, %v24_v1  ;;  %v26_v6 = vld [vmem:[#allocation2 + $0x18] sm:$0xff] }
  0x15   :  { %v90_v5 = vmul.f32 -1.442695, %v25_v2  ;;  %v27_v7 = vld [vmem:[#allocation2 + $0x20] sm:$0xff]  ;;  %v28_v8 = vld [vmem:[#allocation2 + $0x28] sm:$0xff]  ;;  %v91_v9 = vmul.f32 -1.442695, %v26_v6 }
  0x16   :  { %98 = vpow2.f32 %v88_v3  ;;  %v92_v10 = vmul.f32 -1.442695, %v27_v7  ;;  %v93_v11 = vmul.f32 -1.442695, %v28_v8  ;;  %s76_s20 = sshll.u32 %s173_s0, 4  ;;  %s77_s20 = int_to_ptr.vmem [resolvable:$true] %s76_s20 }
  0x17   :  { %100 = vpow2.f32 %v89_v4  ;;  %s144_s21 = scalar_lea.vmem %s77_s20, 768  ;;  %p149_p9 = scmp.lt.s32.totalorder %s77_s20, %s77_s20 }
  0x18   :  { %102 = vpow2.f32 %v90_v5  ;;  %p145_p8 = scmp.ne.s32.totalorder %s77_s20, %s144_s21  ;;  %p150_p10 = scmp.lt.s32.totalorder %s144_s21, %s144_s21 }
  0x19   :  { %104 = vpow2.f32 %v91_v9 }
  0x1a   :  { %106 = vpow2.f32 %v92_v10  ;;  %p151_p11 = por %p150_p10, %p149_p9 }
  0x1b   :  { %108 = vpow2.f32 %v93_v11 }
  0x1c   :  { %p152_p12 = pnand %p151_p11, %p145_p8 }
  0x20   :  { %v99_v12 = vpop.eup %98 }
  0x21   :  { %v101_v13 = vpop.eup %100  ;;  %v47_v14 = vadd.f32 1.0, %v99_v12 }
  0x22   :  { %v103_v15 = vpop.eup %102  ;;  %v48_v16 = vadd.f32 1.0, %v101_v13 }
  0x23   :  { %v105_v17 = vpop.eup %104  ;;  %110 = vrcp.f32 %v47_v14  ;;  %v49_v18 = vadd.f32 1.0, %v103_v15 }
  0x24   :  { %v107_v19 = vpop.eup %106  ;;  %112 = vrcp.f32 %v48_v16  ;;  %v50_v20 = vadd.f32 1.0, %v105_v17 }
  0x25   :  { %v109_v21 = vpop.eup %108  ;;  %114 = vrcp.f32 %v49_v18  ;;  %v51_v22 = vadd.f32 1.0, %v107_v19 }
  0x26   :  { %116 = vrcp.f32 %v50_v20  ;;  %v52_v23 = vadd.f32 1.0, %v109_v21 }
  0x27   :  { %118 = vrcp.f32 %v51_v22 }
  0x28   :  { %120 = vrcp.f32 %v52_v23 }
  0x2d   :  { %v111_v24 = vpop.eup %110 }
  0x2e   :  { %v113_v25 = vpop.eup %112  ;;  %65 = vst [vmem:[#allocation5] sm:$0xff] %v111_v24 }
  0x2f   :  { %v115_v26 = vpop.eup %114  ;;  %66 = vst [vmem:[#allocation5 + $0x8] sm:$0xff] %v113_v25 }
  0x30   :  { %v117_v27 = vpop.eup %116  ;;  %67 = vst [vmem:[#allocation5 + $0x10] sm:$0xff] %v115_v26 }
  0x31   :  { %v119_v28 = vpop.eup %118  ;;  %68 = vst [vmem:[#allocation5 + $0x18] sm:$0xff] %v117_v27 }
  0x32   :  { %v121_v29 = vpop.eup %120  ;;  %69 = vst [vmem:[#allocation5 + $0x20] sm:$0xff] %v119_v28 }
  0x33   :  { %70 = vst [vmem:[#allocation5 + $0x28] sm:$0xff] %v121_v29 }
  0x34   :  { %155 = shalt.err (!%p152_p12)
}
  0x35   :  { %s156_s24 = scalar_lea.hbm %s215_s1, 768 }
  0x36   :  { %p157_p13 = scmp.ne.s32.totalorder %s215_s1, %s156_s24  ;;  %p160_p0 = scmp.lt.u32.totalorder %s156_s24, %s215_s1 }
  0x38   :  { %p162_p1 = pnand %p160_p0, %p157_p13 }
  0x3a   :  { %165 = shalt.err (!%p162_p1)
}
  0x3b   :  { %82 = dma.vmem_to_hbm [thread:$0]  %s77_s20, 768, %s215_s1, [#allocation4], %s171_s16, %s171_s16, %s172_s17  }
  0x3c   :  { %168 = dma.done.wait [#allocation4], 768  }
  0x3d   :  { %169 = vsyncadd [#allocation4], 4294966528 }
  0x3e   :  { %86 = vsyncpa [#allocation3], 1 }
  0x3f   :  { %87 = vsyncpa [#allocation4], 1 }

</bundles_post_ra>
